<compile_context>
chip_gen: v7x
topology: tpu7x:2x2x1
jax: 0.10.0
libtpu: 0.0.40
codegen_flags: <defaults>
</compile_context>

<pallas_src>
import functools
import math

import jax
import jax.numpy as jnp
from jax.experimental import pallas as pl
from jax.experimental.pallas import tpu as pltpu


# ---------------------------------------------------------------------------
# helpers
# ---------------------------------------------------------------------------
# Scoped-VMEM budget: above the default scoped limit on v5e/v6e/v7x
# (16/32/32 MiB) and below v7x's 64 MiB physical VMEM, so one setting is legal
# on all three generations.
_VMEM_LIMIT_BYTES = 48 * 1024 * 1024


def _cparams(dims):
    return pltpu.CompilerParams(dimension_semantics=dims,
                                vmem_limit_bytes=_VMEM_LIMIT_BYTES)


def _pick_tile(size, target, unit):
    """Largest multiple of `unit` that divides `size` and is <= `target`;
    falls back to the full extent (always a legal block) when nothing divides.
    # TODO(synk): replace the full-extent fallback with pl.cdiv grids +
    # padding/masking for huge non-divisible sequence lengths (v7x VMEM)."""
    if size <= target:
        return size
    t = (target // unit) * unit
    while t >= unit:
        if size % t == 0:
            return t
        t -= unit
    return size


# ---------------------------------------------------------------------------
# kernels
# ---------------------------------------------------------------------------
def _ln_matmul_kernel(x_ref, g_ref, b_ref, w_ref, o_ref, *, eps):
    """o = LayerNorm(x) @ w   (LN prologue fused into a bias-free projection)."""
    x = x_ref[...].astype(jnp.float32)
    mean = jnp.mean(x, axis=-1, keepdims=True)
    var = jnp.mean(jnp.square(x - mean), axis=-1, keepdims=True)
    y = (x - mean) * jax.lax.rsqrt(var + eps)
    y = y * g_ref[...].astype(jnp.float32) + b_ref[...].astype(jnp.float32)
    # TODO(synk): for very large K (>=2048) hoist LN into a VMEM scratch /
    # K-tile the contraction; at SD dims full-K is fine.
    o_ref[...] = jnp.dot(y.astype(x_ref.dtype), w_ref[...],
                         preferred_element_type=jnp.float32).astype(o_ref.dtype)


def _ln_geglu_kernel(x_ref, g_ref, b_ref, wx_ref, bx_ref, wg_ref, bg_ref,
                     o_ref, *, eps):
    """o = (LN(x) @ wx + bx) * gelu(LN(x) @ wg + bg)   (LN + GEGLU fused)."""
    x = x_ref[...].astype(jnp.float32)
    mean = jnp.mean(x, axis=-1, keepdims=True)
    var = jnp.mean(jnp.square(x - mean), axis=-1, keepdims=True)
    y = (x - mean) * jax.lax.rsqrt(var + eps)
    y = (y * g_ref[...].astype(jnp.float32)
         + b_ref[...].astype(jnp.float32)).astype(x_ref.dtype)
    hx = (jnp.dot(y, wx_ref[...], preferred_element_type=jnp.float32)
          + bx_ref[...].astype(jnp.float32))
    hg = (jnp.dot(y, wg_ref[...], preferred_element_type=jnp.float32)
          + bg_ref[...].astype(jnp.float32))
    # exact (erf) GELU — matches torch.nn.functional.gelu default
    gelu = 0.5 * hg * (1.0 + jax.lax.erf(hg * (1.0 / math.sqrt(2.0))))
    o_ref[...] = (hx * gelu).astype(o_ref.dtype)


def _matmul_kernel(x_ref, w_ref, o_ref, acc_ref):
    """o = x @ w   (K-tiled, fp32 VMEM accumulator, bias-free)."""
    @pl.when(pl.program_id(2) == 0)
    def _init():
        acc_ref[...] = jnp.zeros_like(acc_ref)

    acc_ref[...] += jnp.dot(x_ref[...], w_ref[...],
                            preferred_element_type=jnp.float32)

    @pl.when(pl.program_id(2) == pl.num_programs(2) - 1)
    def _done():
        o_ref[...] = acc_ref[...].astype(o_ref.dtype)


def _matmul_bias_res_kernel(x_ref, w_ref, b_ref, r_ref, o_ref, acc_ref):
    """o = x @ w + b + r   (K-tiled; bias + residual-add fused epilogue)."""
    @pl.when(pl.program_id(2) == 0)
    def _init():
        acc_ref[...] = jnp.zeros_like(acc_ref)

    acc_ref[...] += jnp.dot(x_ref[...], w_ref[...],
                            preferred_element_type=jnp.float32)

    @pl.when(pl.program_id(2) == pl.num_programs(2) - 1)
    def _done():
        out = (acc_ref[...] + b_ref[...].astype(jnp.float32)
               + r_ref[...].astype(jnp.float32))
        o_ref[...] = out.astype(o_ref.dtype)


def _mha_out_kernel(q_ref, k_ref, v_ref, wo_ref, bo_ref, r_ref, o_ref,
                    m_sc, l_sc, acc_sc):
    """Flash-style MHA with the to_out projection + bias + residual fused as a
    per-q-tile epilogue.

    Blocks (kv axis innermost in the grid):
      q (1, H, tq, d)   -- block index constant across kv steps
      k/v (1, H, tkv, d)
      wo (H, d, dim), bo (1, dim), residual r (1, tq, dim), out o (1, tq, dim)
    QK^T and p@V use input-dtype operands (bf16 on MXU when the block runs
    bf16) with fp32 accumulation; softmax stats / rescale stay fp32.  The
    1/sqrt(d_head) scale is pre-folded into the q projection weights.
    """
    kv_i = pl.program_id(2)

    @pl.when(kv_i == 0)
    def _init():
        m_sc[...] = jnp.full_like(m_sc, -jnp.inf)
        l_sc[...] = jnp.zeros_like(l_sc)
        acc_sc[...] = jnp.zeros_like(acc_sc)

    # one head-batched MXU op stream per kv step (no per-head Python loop)
    sim = jnp.einsum('hqd,hkd->hqk', q_ref[0], k_ref[0],
                     preferred_element_type=jnp.float32)          # (H,tq,tkv)
    m_prev = m_sc[...]
    m_new = jnp.maximum(m_prev, jnp.max(sim, axis=-1, keepdims=True))
    alpha = jnp.exp(m_prev - m_new)
    p = jnp.exp(sim - m_new)
    l_sc[...] = alpha * l_sc[...] + jnp.sum(p, axis=-1, keepdims=True)
    acc_sc[...] = alpha * acc_sc[...] + jnp.einsum(
        'hqk,hkd->hqd', p.astype(v_ref.dtype), v_ref[0],
        preferred_element_type=jnp.float32)
    m_sc[...] = m_new

    @pl.when(kv_i == pl.num_programs(2) - 1)
    def _finalize():
        # normalize once per q-tile (EUP approx reciprocal), then fused
        # to_out: sum_h ctx_h @ wo_h + bo + residual — one lane-dense store.
        ctx = acc_sc[...] * pl.reciprocal(l_sc[...], approx=True)  # (H,tq,d)
        proj = jnp.einsum('hqd,hdc->hqc', ctx.astype(v_ref.dtype), wo_ref[...],
                          preferred_element_type=jnp.float32)      # (H,tq,dim)
        out = (jnp.sum(proj, axis=0)
               + bo_ref[...].astype(jnp.float32)
               + r_ref[0].astype(jnp.float32))
        o_ref[0] = out.astype(o_ref.dtype)


# ---------------------------------------------------------------------------
# pallas_call wrappers
# ---------------------------------------------------------------------------
def pallas_ln_matmul(x2d, gamma, beta, w, *, eps=1e-5, tm=512, tn=512):
    M, K = x2d.shape
    Kw, N = w.shape
    assert Kw == K
    tm = _pick_tile(M, tm, 8)
    tn = _pick_tile(N, tn, 128)
    return pl.pallas_call(
        functools.partial(_ln_matmul_kernel, eps=eps),
        out_shape=jax.ShapeDtypeStruct((M, N), x2d.dtype),
        grid=(M // tm, N // tn),
        in_specs=[pl.BlockSpec((tm, K), lambda i, j: (i, 0)),
                  pl.BlockSpec((1, K), lambda i, j: (0, 0)),
                  pl.BlockSpec((1, K), lambda i, j: (0, 0)),
                  pl.BlockSpec((K, tn), lambda i, j: (0, j))],
        out_specs=pl.BlockSpec((tm, tn), lambda i, j: (i, j)),
        compiler_params=_cparams(("parallel", "parallel")),
    )(x2d, gamma, beta, w)


def pallas_ln_geglu(x2d, gamma, beta, wx, bx, wg, bg, *, eps=1e-5,
                    tm=512, tn=512):
    M, K = x2d.shape
    Kw, N = wx.shape
    assert Kw == K and wg.shape == (K, N)
    tm = _pick_tile(M, tm, 8)
    tn = _pick_tile(N, tn, 128)
    return pl.pallas_call(
        functools.partial(_ln_geglu_kernel, eps=eps),
        out_shape=jax.ShapeDtypeStruct((M, N), x2d.dtype),
        grid=(M // tm, N // tn),
        in_specs=[pl.BlockSpec((tm, K), lambda i, j: (i, 0)),
                  pl.BlockSpec((1, K), lambda i, j: (0, 0)),
                  pl.BlockSpec((1, K), lambda i, j: (0, 0)),
                  pl.BlockSpec((K, tn), lambda i, j: (0, j)),
                  pl.BlockSpec((1, tn), lambda i, j: (0, j)),
                  pl.BlockSpec((K, tn), lambda i, j: (0, j)),
                  pl.BlockSpec((1, tn), lambda i, j: (0, j))],
        out_specs=pl.BlockSpec((tm, tn), lambda i, j: (i, j)),
        compiler_params=_cparams(("parallel", "parallel")),
    )(x2d, gamma, beta, wx, bx, wg, bg)


def pallas_matmul(x2d, w, *, tm=512, tn=512, tk=512):
    M, K = x2d.shape
    Kw, N = w.shape
    assert Kw == K
    tm = _pick_tile(M, tm, 8)
    tn = _pick_tile(N, tn, 128)
    tk = _pick_tile(K, tk, 128)
    cost = pl.CostEstimate(
        flops=2 * M * N * K, transcendentals=0,
        bytes_accessed=int(M * K * x2d.dtype.itemsize
                           + K * N * w.dtype.itemsize
                           + M * N * x2d.dtype.itemsize))
    return pl.pallas_call(
        _matmul_kernel,
        out_shape=jax.ShapeDtypeStruct((M, N), x2d.dtype),
        grid=(M // tm, N // tn, K // tk),
        in_specs=[pl.BlockSpec((tm, tk), lambda i, j, kk: (i, kk)),
                  pl.BlockSpec((tk, tn), lambda i, j, kk: (kk, j))],
        out_specs=pl.BlockSpec((tm, tn), lambda i, j, kk: (i, j)),
        scratch_shapes=[pltpu.VMEM((tm, tn), jnp.float32)],
        compiler_params=_cparams(("parallel", "parallel", "arbitrary")),
        cost_estimate=cost,
    )(x2d, w)


def pallas_matmul_bias_res(x2d, w, b, r, *, tm=512, tn=512, tk=512):
    M, K = x2d.shape
    Kw, N = w.shape
    assert Kw == K and r.shape == (M, N)
    tm = _pick_tile(M, tm, 8)
    tn = _pick_tile(N, tn, 128)
    tk = _pick_tile(K, tk, 128)
    cost = pl.CostEstimate(
        flops=2 * M * N * K, transcendentals=0,
        bytes_accessed=int(M * K * x2d.dtype.itemsize
                           + K * N * w.dtype.itemsize
                           + 3 * M * N * x2d.dtype.itemsize))
    return pl.pallas_call(
        _matmul_bias_res_kernel,
        out_shape=jax.ShapeDtypeStruct((M, N), x2d.dtype),
        grid=(M // tm, N // tn, K // tk),
        in_specs=[pl.BlockSpec((tm, tk), lambda i, j, kk: (i, kk)),
                  pl.BlockSpec((tk, tn), lambda i, j, kk: (kk, j)),
                  pl.BlockSpec((1, tn), lambda i, j, kk: (0, j)),
                  pl.BlockSpec((tm, tn), lambda i, j, kk: (i, j))],
        out_specs=pl.BlockSpec((tm, tn), lambda i, j, kk: (i, j)),
        scratch_shapes=[pltpu.VMEM((tm, tn), jnp.float32)],
        compiler_params=_cparams(("parallel", "parallel", "arbitrary")),
        cost_estimate=cost,
    )(x2d, w, b, r)


def pallas_mha_out(q, k, v, wo3, bo, res, *, tq=256, tkv=512):
    """Flash MHA + fused output projection + residual.

    q: (B, H, N, d)  k/v: (B, H, M, d)  wo3: (H, d, dim)  bo: (1, dim)
    res: (B, N, dim) residual;  returns (B, N, dim).
    """
    B, H, N, d = q.shape
    Bk, Hk, M, dk = k.shape
    assert (Bk, Hk, dk) == (B, H, d) and v.shape == k.shape
    Hw, dw, dim = wo3.shape
    assert (Hw, dw) == (H, d) and bo.shape == (1, dim)
    assert res.shape == (B, N, dim)
    tq = _pick_tile(N, tq, 8)
    tkv = _pick_tile(M, tkv, 8)
    return pl.pallas_call(
        _mha_out_kernel,
        out_shape=jax.ShapeDtypeStruct((B, N, dim), res.dtype),
        grid=(B, N // tq, M // tkv),
        in_specs=[
            pl.BlockSpec((1, H, tq, d), lambda b, qi, ki: (b, 0, qi, 0)),
            pl.BlockSpec((1, H, tkv, d), lambda b, qi, ki: (b, 0, ki, 0)),
            pl.BlockSpec((1, H, tkv, d), lambda b, qi, ki: (b, 0, ki, 0)),
            pl.BlockSpec((H, d, dim), lambda b, qi, ki: (0, 0, 0)),
            pl.BlockSpec((1, dim), lambda b, qi, ki: (0, 0)),
            pl.BlockSpec((1, tq, dim), lambda b, qi, ki: (b, qi, 0)),
        ],
        out_specs=pl.BlockSpec((1, tq, dim), lambda b, qi, ki: (b, qi, 0)),
        scratch_shapes=[pltpu.VMEM((H, tq, 1), jnp.float32),     # m (running max)
                        pltpu.VMEM((H, tq, 1), jnp.float32),     # l (running sum)
                        pltpu.VMEM((H, tq, d), jnp.float32)],    # acc
        compiler_params=_cparams(("parallel", "parallel", "arbitrary")),
    )(q, k, v, wo3, bo, res)


# ---------------------------------------------------------------------------
# Module forward (wrapper glue: cheap reshapes + head-split transposes)
# ---------------------------------------------------------------------------
def _split_heads(t2d, B, N, H, d):
    # (B*N, H*d) -> (B, H, N, d): one XLA transpose in HBM so the attention
    # kernel can use head-batched einsums with no in-kernel relayout.
    return t2d.reshape(B, N, H, d).transpose(0, 2, 1, 3)


def basic_transformer_block(x, context, params, n_heads, d_head):
    B, N, dim = x.shape
    Bc, Mc, cdim = context.shape
    H, d = n_heads, d_head
    inner = H * d
    x2 = x.reshape(B * N, dim)
    c2 = context.reshape(Bc * Mc, cdim)

    # ---- attn1: self-attention ------------------------------------------
    # LayerNorm1 fused as prologue of ONE fused (dim, 3*inner) QKV projection;
    # 1/sqrt(d) is pre-folded into the q columns of the weight at init.
    p1 = params["attn1"]
    g1, b1 = params["ln1"]
    qkv = pallas_ln_matmul(x2, g1, b1, p1["wqkv"])           # (B*N, 3*inner)
    q = _split_heads(qkv[:, :inner], B, N, H, d)
    k = _split_heads(qkv[:, inner:2 * inner], B, N, H, d)
    v = _split_heads(qkv[:, 2 * inner:], B, N, H, d)
    # to_out[0] (wo, bo) + residual fused into the MHA finalize; dropout p=0.
    x3 = pallas_mha_out(q, k, v, p1["wo3"], p1["bo"], x)     # (B, N, dim)
    x2 = x3.reshape(B * N, dim)

    # ---- attn2: cross-attention on `context` -----------------------------
    p2 = params["attn2"]
    g2, b2 = params["ln2"]
    q = pallas_ln_matmul(x2, g2, b2, p2["wq"])               # LN2 fused, scaled
    kv = pallas_matmul(c2, p2["wkv"])                        # fused K|V proj
    qh = _split_heads(q, B, N, H, d)
    kh = _split_heads(kv[:, :inner], Bc, Mc, H, d)
    vh = _split_heads(kv[:, inner:], Bc, Mc, H, d)
    x3 = pallas_mha_out(qh, kh, vh, p2["wo3"], p2["bo"], x3)
    x2 = x3.reshape(B * N, dim)

    # ---- ff: LN3 + GEGLU fused with first matmul; bias + residual fused ---
    pf = params["ff"]
    g3, b3 = params["ln3"]
    h = pallas_ln_geglu(x2, g3, b3, pf["w1x"], pf["b1x"], pf["w1g"], pf["b1g"])
    x2 = pallas_matmul_bias_res(h, pf["w2"], pf["b2"], x2)
    return x2.reshape(B, N, dim)


# ---------------------------------------------------------------------------
# Deterministic parameter init (shapes per module __init__, fan_in uniform)
# ---------------------------------------------------------------------------
def init_params(key, dim, n_heads, d_head, context_dim, ff_mult=4,
                dtype=jnp.float32):
    inner = n_heads * d_head
    ff_inner = dim * ff_mult
    scale = float(d_head) ** -0.5
    keys = jax.random.split(key, 13)

    def w(k, shape, fan_in):
        bound = 1.0 / math.sqrt(fan_in)
        return jax.random.uniform(k, shape, jnp.float32,
                                  -bound, bound).astype(dtype)

    ones = lambda n: jnp.ones((1, n), dtype)
    zeros = lambda n: jnp.zeros((1, n), dtype)

    # self-attn: pre-concatenated QKV weight, 1/sqrt(d) folded into q columns
    wq1 = w(keys[0], (dim, inner), dim) * scale
    wk1 = w(keys[1], (dim, inner), dim)
    wv1 = w(keys[2], (dim, inner), dim)
    wo1 = w(keys[3], (inner, dim), inner)
    # cross-attn: scaled q weight, pre-concatenated K|V weight
    wq2 = w(keys[5], (dim, inner), dim) * scale
    wk2 = w(keys[6], (context_dim, inner), context_dim)
    wv2 = w(keys[7], (context_dim, inner), context_dim)
    wo2 = w(keys[8], (inner, dim), inner)

    return {
        "attn1": {
            "wqkv": jnp.concatenate([wq1, wk1, wv1], axis=1),   # (dim, 3*inner)
            "wo3": wo1.reshape(n_heads, d_head, dim),           # (H, d, dim)
            "bo": w(keys[4], (1, dim), inner),
        },
        "attn2": {
            "wq": wq2,
            "wkv": jnp.concatenate([wk2, wv2], axis=1),         # (cdim, 2*inner)
            "wo3": wo2.reshape(n_heads, d_head, dim),
            "bo": w(keys[9], (1, dim), inner),
        },
        "ff": {
            # GEGLU proj = Linear(dim, 2*ff_inner) split into (value | gate)
            "w1x": w(keys[10], (dim, ff_inner), dim),
            "b1x": zeros(ff_inner),
            "w1g": w(keys[11], (dim, ff_inner), dim),
            "b1g": zeros(ff_inner),
            "w2": w(keys[12], (ff_inner, dim), ff_inner),
            "b2": zeros(dim),
        },
        "ln1": (ones(dim), zeros(dim)),
        "ln2": (ones(dim), zeros(dim)),
        "ln3": (ones(dim), zeros(dim)),
    }


if __name__ == "__main__":
    # batch=1 (the PyTorch self-attn fused-qkv einsum path requires it),
    # seq=16, dim=32, 4 heads x 8 head_dim, cross-attn context len 8, dim 16.
    dim, n_heads, d_head = 32, 4, 8
    context_dim = 16
    B, N, M = 1, 16, 8
    dtype = jnp.float32   # pass jnp.bfloat16 here to run the whole block bf16

    key = jax.random.PRNGKey(0)
    kx, kc, kp = jax.random.split(key, 3)
    x = jax.random.normal(kx, (B, N, dim), dtype)
    context = jax.random.normal(kc, (B, M, context_dim), dtype)
    params = init_params(kp, dim, n_heads, d_head, context_dim, dtype=dtype)

    out = basic_transformer_block(x, context, params, n_heads, d_head)
    out = jax.block_until_ready(out)
    assert out.shape == (B, N, dim) and out.dtype == dtype
    print("KERNEL_OK")
</pallas_src>

<mosaic_0001>
module attributes {stable_mosaic.version = 11 : i64} {
  func.func @_ln_matmul_kernel(%arg0: i32, %arg1: i32, %arg2: memref<16x32xf32, #tpu.memory_space<vmem>>, %arg3: memref<1x32xf32, #tpu.memory_space<vmem>>, %arg4: memref<1x32xf32, #tpu.memory_space<vmem>>, %arg5: memref<32x96xf32, #tpu.memory_space<vmem>>, %arg6: memref<16x96xf32, #tpu.memory_space<vmem>>) attributes {dimension_semantics = [#tpu.dimension_semantics<parallel>, #tpu.dimension_semantics<parallel>], iteration_bounds = array<i64: 1, 1>, scalar_prefetch = 0 : i64, scratch_operands = 0 : i64, tpu.core_type = #tpu.core_type<tc>, window_params = [{transform_indices = @transform_0, window_bounds = array<i64: 16, 32>}, {pipeline_mode = #tpu.pipeline_mode<synchronous>, transform_indices = @transform_1, window_bounds = array<i64: 1, 32>}, {pipeline_mode = #tpu.pipeline_mode<synchronous>, transform_indices = @transform_2, window_bounds = array<i64: 1, 32>}, {transform_indices = @transform_3, window_bounds = array<i64: 32, 96>}, {transform_indices = @transform_4, window_bounds = array<i64: 16, 96>}]} {
    %c0 = arith.constant 0 : index
    %c0_0 = arith.constant 0 : index
    %0 = vector.load %arg2[%c0, %c0_0] : memref<16x32xf32, #tpu.memory_space<vmem>>, vector<16x32xf32>
    %cst = arith.constant dense<0.000000e+00> : vector<16xf32>
    %1 = vector.multi_reduction <add>, %0, %cst [1] : vector<16x32xf32> to vector<16xf32>
    %2 = vector.shape_cast %1 : vector<16xf32> to vector<16x1xf32>
    %cst_1 = arith.constant 3.200000e+01 : f32
    %3 = vector.broadcast %cst_1 : f32 to vector<16x1xf32>
    %4 = arith.divf %2, %3 : vector<16x1xf32>
    %5 = vector.broadcast %4 : vector<16x1xf32> to vector<16x32xf32>
    %6 = arith.subf %0, %5 : vector<16x32xf32>
    %7 = arith.mulf %6, %6 : vector<16x32xf32>
    %cst_2 = arith.constant dense<0.000000e+00> : vector<16xf32>
    %8 = vector.multi_reduction <add>, %7, %cst_2 [1] : vector<16x32xf32> to vector<16xf32>
    %9 = vector.shape_cast %8 : vector<16xf32> to vector<16x1xf32>
    %cst_3 = arith.constant 3.200000e+01 : f32
    %10 = vector.broadcast %cst_3 : f32 to vector<16x1xf32>
    %11 = arith.divf %9, %10 : vector<16x1xf32>
    %12 = vector.broadcast %4 : vector<16x1xf32> to vector<16x32xf32>
    %13 = arith.subf %0, %12 : vector<16x32xf32>
    %cst_4 = arith.constant 9.99999974E-6 : f32
    %14 = vector.broadcast %cst_4 : f32 to vector<16x1xf32>
    %15 = arith.addf %11, %14 : vector<16x1xf32>
    %16 = math.rsqrt %15 : vector<16x1xf32>
    %17 = vector.broadcast %16 : vector<16x1xf32> to vector<16x32xf32>
    %18 = arith.mulf %13, %17 : vector<16x32xf32>
    %c0_5 = arith.constant 0 : index
    %c0_6 = arith.constant 0 : index
    %19 = vector.load %arg3[%c0_5, %c0_6] : memref<1x32xf32, #tpu.memory_space<vmem>>, vector<1x32xf32>
    %20 = vector.broadcast %19 : vector<1x32xf32> to vector<16x32xf32>
    %21 = arith.mulf %18, %20 : vector<16x32xf32>
    %c0_7 = arith.constant 0 : index
    %c0_8 = arith.constant 0 : index
    %22 = vector.load %arg4[%c0_7, %c0_8] : memref<1x32xf32, #tpu.memory_space<vmem>>, vector<1x32xf32>
    %23 = vector.broadcast %22 : vector<1x32xf32> to vector<16x32xf32>
    %24 = arith.addf %21, %23 : vector<16x32xf32>
    %c0_9 = arith.constant 0 : index
    %c0_10 = arith.constant 0 : index
    %25 = vector.load %arg5[%c0_9, %c0_10] : memref<32x96xf32, #tpu.memory_space<vmem>>, vector<32x96xf32>
    %cst_11 = arith.constant dense<0.000000e+00> : vector<16x96xf32>
    %26 = tpu.matmul %24, %25, %cst_11 {dimension_numbers = #tpu.dot_dimension_numbers<[1], [0], [0], [1], [0, 0, 1, 1], [], []>} : vector<16x32xf32>, vector<32x96xf32>, vector<16x96xf32> -> vector<16x96xf32>
    %c0_12 = arith.constant 0 : index
    %c0_13 = arith.constant 0 : index
    %27 = vector.load %arg6[%c0_12, %c0_13] : memref<16x96xf32, #tpu.memory_space<vmem>>, vector<16x96xf32>
    tpu.vector_store %arg6[%c0_12, %c0_13], %26 {strides = array<i32>} : memref<16x96xf32, #tpu.memory_space<vmem>>, vector<16x96xf32>,
    return
  }
  func.func @transform_0(%arg0: i32, %arg1: i32) -> (i32, i32) {
    %c0_i32 = arith.constant 0 : i32
    %c0_i32_0 = arith.constant 0 : i32
    return %arg0, %c0_i32 : i32, i32
  }
  func.func @transform_1(%arg0: i32, %arg1: i32) -> (i32, i32) {
    %c0_i32 = arith.constant 0 : i32
    %c0_i32_0 = arith.constant 0 : i32
    %c0_i32_1 = arith.constant 0 : i32
    return %c0_i32, %c0_i32_0 : i32, i32
  }
  func.func @transform_2(%arg0: i32, %arg1: i32) -> (i32, i32) {
    %c0_i32 = arith.constant 0 : i32
    %c0_i32_0 = arith.constant 0 : i32
    %c0_i32_1 = arith.constant 0 : i32
    return %c0_i32, %c0_i32_0 : i32, i32
  }
  func.func @transform_3(%arg0: i32, %arg1: i32) -> (i32, i32) {
    %c0_i32 = arith.constant 0 : i32
    %c0_i32_0 = arith.constant 0 : i32
    return %c0_i32, %arg1 : i32, i32
  }
  func.func @transform_4(%arg0: i32, %arg1: i32) -> (i32, i32) {
    %c0_i32 = arith.constant 0 : i32
    return %arg0, %arg1 : i32, i32
  }
}

</mosaic_0001>

<bundles_post_ra>
// kernel: tpu_custom_call.1
= control target key start
LH: loop header
LB: loop body
LE: loop exit
PB: predicated region body
PF: predicated region fallthrough
CT: control target
= control target key end

     0   :  { %9 = vsyncpa [#allocation3], 0  ;;  %s397_s0 = inlined_call_operand.hbm [shape: f32[16,32], index: 0, kind: input, shape index: {}]   ;;  %s398_s1 = inlined_call_operand.vmem [shape: f32[1,32], index: 1, kind: input, shape index: {}]   ;;  %s399_s2 = inlined_call_operand.vmem [shape: f32[1,32], index: 2, kind: input, shape index: {}]   ;;  %s400_s3 = inlined_call_operand.hbm [shape: f32[32,96], index: 3, kind: input, shape index: {}]   ;;  %s401_s4 = inlined_call_operand.hbm [shape: f32[16,96], index: 4, kind: output, shape index: {}]  }
   0x1   :  { %10 = vsyncpa [#allocation6], 0 }
   0x2   :  { %11 = vsyncpa [#allocation4], 0  ;;  %s310_s15 = smov [#allocation2]   ;;  %s238_s19 = scalar_lea.hbm %s397_s0, 256 }
   0x3   :  { %s17_s16 = sshll.u32 %s310_s15, 4  ;;  %p239_p0 = scmp.ne.s32.totalorder %s397_s0, %s238_s19  ;;  %s18_s16 = int_to_ptr.vmem [resolvable:$true] %s17_s16 }
   0x4   :  { %p242_p1 = scmp.lt.u32.totalorder %s238_s19, %s397_s0 }
   0x6   :  { %p244_p2 = pnand %p242_p1, %p239_p0 }
   0x8   :  { %247 = shalt.err (!%p244_p2)
}
   0x9   :  { %s248_s24 = scalar_lea.vmem %s18_s16, 256  ;;  %p253_p4 = scmp.lt.s32.totalorder %s18_s16, %s18_s16 }
   0xa   :  { %p249_p3 = scmp.ne.s32.totalorder %s18_s16, %s248_s24  ;;  %p254_p5 = scmp.lt.s32.totalorder %s248_s24, %s248_s24 }
   0xc   :  { %p255_p6 = por %p254_p5, %p253_p4 }
   0xe   :  { %p256_p7 = pnand %p255_p6, %p249_p3 }
  0x10   :  { %259 = shalt.err (!%p256_p7)
}
  0x11   :  { %s311_s25 = smov 128   ;;  %s312_s26 = smov 8  }
  0x12   :  { %23 = dma.hbm_to_vmem [thread:$0]  %s397_s0, 256, %s18_s16, [#allocation3], %s311_s25, %s311_s25, %s312_s26  }
  0x13   :  { %s313_s29 = smov [#allocation5]   ;;  %s260_s7 = scalar_lea.hbm %s400_s3, 512 }
  0x14   :  { %s33_s30 = sshll.u32 %s313_s29, 4  ;;  %p261_p8 = scmp.ne.s32.totalorder %s400_s3, %s260_s7  ;;  %s34_s30 = int_to_ptr.vmem [resolvable:$true] %s33_s30 }
  0x15   :  { %p264_p9 = scmp.lt.u32.totalorder %s260_s7, %s400_s3 }
  0x17   :  { %p266_p10 = pnand %p264_p9, %p261_p8 }
  0x19   :  { %269 = shalt.err (!%p266_p10)
}
  0x1a   :  { %s270_s12 = scalar_lea.vmem %s34_s30, 512  ;;  %p275_p12 = scmp.lt.s32.totalorder %s34_s30, %s34_s30 }
  0x1b   :  { %p271_p11 = scmp.ne.s32.totalorder %s34_s30, %s270_s12  ;;  %p276_p13 = scmp.lt.s32.totalorder %s270_s12, %s270_s12 }
  0x1d   :  { %p277_p0 = por %p276_p13, %p275_p12 }
  0x1f   :  { %p278_p1 = pnand %p277_p0, %p271_p11 }
  0x21   :  { %281 = shalt.err (!%p278_p1)
}
  0x22   :  { %39 = dma.hbm_to_vmem [thread:$0]  %s400_s3, 512, %s34_s30, [#allocation6], %s311_s25, %s311_s25, %s312_s26  }
  0x23   :  { %304 = dma.done.wait [#allocation3], 256  }
  0x24   :  { %305 = vsyncadd [#allocation3], 4294967040 }
  0x25   :  { %306 = dma.done.wait [#allocation6], 512  }
  0x26   :  { %307 = vsyncadd [#allocation6], 4294966784  ;;  %vm48_vm0 = vcmask 261120   ;;  %v46_v0 = vld [vmem:[#allocation2] sm:$0xff]  ;;  %v47_v1 = vld [vmem:[#allocation2 + $0x8] sm:$0xff]  ;;  %s314_s17 = smov [#allocation7]  }
  0x27   :  { %v49_v2 = vsel %vm48_vm0, %v46_v0, 0.0  ;;  %v52_v3 = vsel %vm48_vm0, %v47_v1, 0.0  ;;  %v94_v14 = vld [vmem:[#allocation5] sm:$0xff]  ;;  %v95_v15 = vld [vmem:[#allocation5 + $0x8] sm:$0xff]  ;;  %v96_v16 = vld [vmem:[#allocation5 + $0x10] sm:$0xff]  ;;  %s187_s18 = sshll.u32 %s314_s17, 4  ;;  %s188_s18 = int_to_ptr.vmem [resolvable:$true] %s187_s18 }
  0x28   :  { %50 = vadd.xlane.f32.xlu0 %v49_v2  ;;  %v221_v17 = vpack.c.bf16 %v95_v15, %v94_v14  ;;  %v97_v18 = vld [vmem:[#allocation5 + $0x18] sm:$0xff]  ;;  %v200_v27 = vld [vmem:[%s398_s1] ss:$0 sm:$0xff]  ;;  %vm179_vm1 = vcmask 785408   ;;  %s282_s1 = scalar_lea.vmem %s188_s18, 256  ;;  %p287_p3 = scmp.lt.s32.totalorder %s188_s18, %s188_s18 }
  0x29   :  { %v225_v19 = vpack.c.bf16 %v97_v18, %v96_v16  ;;  %v201_v29 = vld [vmem:[%s399_s2] ss:$0 sm:$0xff]  ;;  %p283_p2 = scmp.ne.s32.totalorder %s188_s18, %s282_s1  ;;  %p288_p4 = scmp.lt.s32.totalorder %s282_s1, %s282_s1 }
  0x2a   :  { %222 = vmatprep.subr.bf16.mxu0 %v221_v17 }
  0x2b   :  { %224 = vmatpush3.bf16.msra.mxu0 %v221_v17  ;;  %p289_p5 = por %p288_p4, %p287_p3 }
  0x2c   :  { %53 = vadd.xlane.f32.xlu0 %v52_v3  ;;  %226 = vmatprep.subr.bf16.mxu0 %v225_v19 }
  0x2d   :  { %p290_p6 = pnand %p289_p5, %p283_p2 }
  0x2f   :  { %228 = vmatpush3.bf16.msra.mxu0 %v225_v19 }
  0xb5   :  { %v51_v4 = vpop.xlane.xlu0 %50 }
  0xb6   :  { %v56_v5 = vmul.f32 0.03125, %v51_v4 }
  0xb8   :  { %v58_v6 = vsub.f32 %v46_v0, %v56_v5 }
  0xb9   :  { %v54_v7 = vpop.xlane.xlu0 %53 }
  0xba   :  { %v57_v8 = vmul.f32 0.03125, %v54_v7  ;;  %v60_v9 = vmul.f32 %v58_v6, %v58_v6 }
  0xbc   :  { %v59_v10 = vsub.f32 %v47_v1, %v57_v8  ;;  %v62_v11 = vsel %vm48_vm0, %v60_v9, 0.0 }
  0xbd   :  { %63 = vadd.xlane.f32.xlu1 %v62_v11 }
  0xbe   :  { %v61_v12 = vmul.f32 %v59_v10, %v59_v10 }
  0xc0   :  { %v65_v13 = vsel %vm48_vm0, %v61_v12, 0.0 }
  0xc1   :  { %66 = vadd.xlane.f32.xlu1 %v65_v13 }
 0x14a   :  { %v64_v20 = vpop.xlane.xlu1 %63 }
 0x14b   :  { %v68_v21 = vmul.f32 0.03125, %v64_v20 }
 0x14d   :  { %v70_v22 = vadd.f32 1e-05, %v68_v21 }
 0x14e   :  { %v67_v23 = vpop.xlane.xlu1 %66 }
 0x14f   :  { %234 = vrsqrt.f32 %v70_v22  ;;  %v69_v24 = vmul.f32 0.03125, %v67_v23 }
 0x151   :  { %v71_v25 = vadd.f32 1e-05, %v69_v24 }
 0x153   :  { %236 = vrsqrt.f32 %v71_v25 }
 0x159   :  { %v235_v26 = vpop.eup %234 }
 0x15a   :  { %v74_v28 = vmul.f32 %v235_v26, %v58_v6 }
 0x15c   :  { %v83_v30 = vmul.f32 %v200_v27, %v74_v28 }
 0x15d   :  { %v237_v31 = vpop.eup %236 }
 0x15e   :  { %v75_v32 = vmul.f32 %v237_v31, %v59_v10  ;;  %v92_v33 = vadd.f32 %v201_v29, %v83_v30 }
 0x160   :  { %v84_v34 = vmul.f32 %v200_v27, %v75_v32  ;;  %218 = vmatprep.mubr.msk.f32.mxu0 %vm48_vm0, %v92_v33 }
 0x162   :  { %v93_v35 = vadd.f32 %v201_v29, %v84_v34 }
 0x164   :  { %219 = vmatmul.mubr.msk.f32.vlgmr.msra.gmra.mrb[0].mxu0 %vm48_vm0, %v93_v35 }
 0x237   :  { %v220_v36 = vpop.f32.mrb[0].mxu0 }
 0x238   :  { %181 = vst.msk [vmem:[#allocation7 + $0x8] sm:$0xff] %vm179_vm1, %v220_v36  ;;  %v170_v37 = vpop.f32.mrb[1].mxu0 }
 0x239   :  { %180 = vst.msk [vmem:[#allocation7] sm:$0xff] %vm179_vm1, %v170_v37 }
 0x23a   :  { %293 = shalt.err (!%p290_p6)
}
 0x23b   :  { %s294_s20 = scalar_lea.hbm %s401_s4, 256 }
 0x23c   :  { %p295_p7 = scmp.ne.s32.totalorder %s401_s4, %s294_s20  ;;  %p298_p8 = scmp.lt.u32.totalorder %s294_s20, %s401_s4 }
 0x23e   :  { %p300_p9 = pnand %p298_p8, %p295_p7 }
 0x240   :  { %303 = shalt.err (!%p300_p9)
}
 0x241   :  { %193 = dma.vmem_to_hbm [thread:$0]  %s188_s18, 256, %s401_s4, [#allocation4], %s311_s25, %s311_s25, %s312_s26  }
 0x242   :  { %308 = dma.done.wait [#allocation4], 256  }
 0x243   :  { %309 = vsyncadd [#allocation4], 4294967040 }
 0x244   :  { %197 = vsyncpa [#allocation3], 1 }
 0x245   :  { %198 = vsyncpa [#allocation6], 1 }
 0x246   :  { %199 = vsyncpa [#allocation4], 1 }

</bundles_post_ra>
